<compile_context>
chip_gen: v7x
topology: tpu7x:2x2x1
jax: 0.10.0
libtpu: 0.0.40
codegen_flags: <defaults>
</compile_context>

<pallas_src>
import functools
import math

import jax
import jax.numpy as jnp
from jax.experimental import pallas as pl
from jax.experimental.pallas import tpu as pltpu

_TARGET_BLOCK_BYTES = 4 << 20   # ~4 MiB per tile (in + out double-buffered = 16 MiB)
_MIN_GRID_STEPS = 4             # enough steps for v7x megacore + pipeline overlap
_VMEM_LIMIT_BYTES = 32 << 20    # safe on v5e/v6e (128 MiB phys) and v7x (64 MiB phys)


# ---------------------------------------------------------------------------
# Kernel
# ---------------------------------------------------------------------------
def _log_kernel(x_ref, o_ref, *, eps, lower_bound, compute_dtype):
    x = x_ref[...].astype(compute_dtype)
    if lower_bound > 0:
        y = jnp.log(x + jnp.asarray(lower_bound, compute_dtype))
    else:
        y = jnp.log(jnp.maximum(x, jnp.asarray(eps, compute_dtype)))
    o_ref[...] = y.astype(o_ref.dtype)


# ---------------------------------------------------------------------------
# Wrapper
# ---------------------------------------------------------------------------
def _round_up(x, m):
    return ((x + m - 1) // m) * m


def log_transform(linear, eps: float = 1e-5, lower_bound: float = 0.0):
    """LogTransform.forward for an N x (C) x T x F (any-rank) array."""
    orig_shape = linear.shape

    # Output / compute dtypes.  bf16 stays native through the log (matches
    # torch's in-dtype semantics; avoids EUP-bound behavior on v7x).
    if linear.dtype in (jnp.dtype(jnp.float32), jnp.dtype(jnp.bfloat16)):
        out_dtype, compute_dtype = linear.dtype, linear.dtype
    elif jnp.issubdtype(linear.dtype, jnp.floating):
        out_dtype, compute_dtype = linear.dtype, jnp.float32
    else:
        out_dtype, compute_dtype = jnp.float32, jnp.float32

    if linear.size == 0:
        return linear.astype(out_dtype)

    # Prepending unit dims is free; guarantees rank >= 2 so the last two
    # block dims are (T-rows, full F).
    x = linear
    if x.ndim < 2:
        x = x.reshape((1,) * (2 - x.ndim) + x.shape)

    shape = x.shape
    leading, T, F = shape[:-2], shape[-2], shape[-1]
    nlead = len(leading)
    lead_total = math.prod(leading)
    itemsize = jnp.dtype(x.dtype).itemsize
    sublane = max(8, 32 // itemsize)            # 8 f32 / 16 bf16 / 32 int8

    # Rows of T per block from the dtype-aware byte budget ...
    bt = max(sublane,
             ((_TARGET_BLOCK_BYTES // itemsize) // max(F, 1)) // sublane * sublane)
    # ... capped so the whole grid has at least _MIN_GRID_STEPS steps.
    steps_from_t = max(1, -(-_MIN_GRID_STEPS // lead_total))
    bt_cap = _round_up(max(1, -(-T // steps_from_t)), sublane)
    bt = min(bt, bt_cap)
    if bt >= T:
        bt = T                                   # full dim: exempt from tiling rule
    grid_t = pl.cdiv(T, bt)                      # ragged last block -> masked stores

    grid = tuple(leading) + (grid_t,)
    block_shape = (1,) * nlead + (bt, F)

    def index_map(*idx):
        return idx[:nlead] + (idx[nlead], 0)

    spec = pl.BlockSpec(block_shape, index_map)
    kernel = functools.partial(
        _log_kernel, eps=float(eps), lower_bound=float(lower_bound),
        compute_dtype=compute_dtype)

    total = x.size
    out = pl.pallas_call(
        kernel,
        out_shape=jax.ShapeDtypeStruct(shape, out_dtype),
        grid=grid,
        in_specs=[spec],
        out_specs=spec,
        compiler_params=pltpu.CompilerParams(
            dimension_semantics=("parallel",) * len(grid),
            vmem_limit_bytes=_VMEM_LIMIT_BYTES),
        cost_estimate=pl.CostEstimate(
            flops=total,
            transcendentals=total,
            bytes_accessed=total * (itemsize + jnp.dtype(out_dtype).itemsize)),
    )(x)

    return out.reshape(orig_shape) if out.shape != orig_shape else out


# ---------------------------------------------------------------------------
# Demo / correctness check
# ---------------------------------------------------------------------------
if __name__ == "__main__":
    key = jax.random.PRNGKey(0)
    k1, k2, k3 = jax.random.split(key, 3)

    eps = 1e-5

    # Case 1: N x T x F f32, F=80 (not a 128 multiple -> masked stores on F),
    # exact zeros to exercise the eps clamp (lower_bound == 0 path).
    N, T, F = 2, 16, 80
    x = jnp.abs(jax.random.normal(k1, (N, T, F), dtype=jnp.float32))
    x = x.at[0, 0, :4].set(0.0)
    out = jax.block_until_ready(log_transform(x, eps=eps, lower_bound=0.0))
    ref = jnp.log(jnp.maximum(x, eps))
    assert out.shape == (N, T, F) and out.dtype == x.dtype
    assert jnp.allclose(out, ref, atol=1e-5, rtol=1e-5)

    # Case 2: lower_bound > 0 path with ragged T (exercises the masked last block).
    lb = 0.1
    x2 = jnp.abs(jax.random.normal(k2, (2, 20, 80), dtype=jnp.float32))
    out2 = jax.block_until_ready(log_transform(x2, eps=eps, lower_bound=lb))
    ref2 = jnp.log(x2 + lb)
    assert out2.shape == x2.shape
    assert jnp.allclose(out2, ref2, atol=1e-5, rtol=1e-5)

    # Case 3: 4-D N x C x T x F bf16 (native bf16 log path, dtype-aware sublane).
    x3 = jnp.abs(jax.random.normal(k3, (2, 2, 12, 40), dtype=jnp.float32))
    x3_bf = x3.astype(jnp.bfloat16)
    out3 = jax.block_until_ready(log_transform(x3_bf, eps=eps, lower_bound=0.0))
    ref3 = jnp.log(jnp.maximum(x3_bf.astype(jnp.float32), eps))
    assert out3.shape == x3_bf.shape and out3.dtype == jnp.bfloat16
    assert jnp.allclose(out3.astype(jnp.float32), ref3, atol=3e-2, rtol=3e-2)

    print("KERNEL_OK")
</pallas_src>

<mosaic_0001>
module attributes {stable_mosaic.version = 11 : i64} {
  func.func @_log_kernel(%arg0: i32, %arg1: i32, %arg2: memref<1x8x80xf32, #tpu.memory_space<vmem>>, %arg3: memref<1x8x80xf32, #tpu.memory_space<vmem>>) attributes {dimension_semantics = [#tpu.dimension_semantics<parallel>, #tpu.dimension_semantics<parallel>], iteration_bounds = array<i64: 2, 2>, scalar_prefetch = 0 : i64, scratch_operands = 0 : i64, tpu.core_type = #tpu.core_type<tc>, window_params = [{transform_indices = @transform_0, window_bounds = array<i64: 1, 8, 80>}, {transform_indices = @transform_1, window_bounds = array<i64: 1, 8, 80>}]} {
    %c0 = arith.constant 0 : index
    %c0_0 = arith.constant 0 : index
    %c0_1 = arith.constant 0 : index
    %0 = vector.load %arg2[%c0, %c0_0, %c0_1] : memref<1x8x80xf32, #tpu.memory_space<vmem>>, vector<1x8x80xf32>
    %cst = arith.constant 9.99999974E-6 : f32
    %1 = vector.broadcast %cst : f32 to vector<1x8x80xf32>
    %2 = arith.maximumf %0, %1 : vector<1x8x80xf32>
    %3 = math.log %2 : vector<1x8x80xf32>
    %c0_2 = arith.constant 0 : index
    %c0_3 = arith.constant 0 : index
    %c0_4 = arith.constant 0 : index
    %4 = vector.load %arg3[%c0_2, %c0_3, %c0_4] : memref<1x8x80xf32, #tpu.memory_space<vmem>>, vector<1x8x80xf32>
    tpu.vector_store %arg3[%c0_2, %c0_3, %c0_4], %3 {strides = array<i32>} : memref<1x8x80xf32, #tpu.memory_space<vmem>>, vector<1x8x80xf32>,
    return
  }
  func.func @transform_0(%arg0: i32, %arg1: i32) -> (i32, i32, i32) {
    %c0_i32 = arith.constant 0 : i32
    %c0_i32_0 = arith.constant 0 : i32
    return %arg0, %arg1, %c0_i32 : i32, i32, i32
  }
  func.func @transform_1(%arg0: i32, %arg1: i32) -> (i32, i32, i32) {
    %c0_i32 = arith.constant 0 : i32
    %c0_i32_0 = arith.constant 0 : i32
    return %arg0, %arg1, %c0_i32 : i32, i32, i32
  }
}

</mosaic_0001>

<bundles_post_ra>
// kernel: tpu_custom_call.1
= control target key start
LH: loop header
LB: loop body
LE: loop exit
PB: predicated region body
PF: predicated region fallthrough
CT: control target
= control target key end

     0   :  { %6 = vsyncpa [#allocation3], 0  ;;  %s688_s0 = inlined_call_operand.hbm [shape: f32[2,16,80], index: 0, kind: input, shape index: {}]   ;;  %s689_s1 = inlined_call_operand.hbm [shape: f32[2,16,80], index: 1, kind: output, shape index: {}]  }
   0x1   :  { %8 = vsyncpa [#allocation3 + $0x1], 0 }
   0x2   :  { %9 = vsyncpa [#allocation4], 0 }
   0x3   :  { %11 = vsyncpa [#allocation4 + $0x1], 0  ;;  %s494_s6 = smov 0   ;;  %s496_s7 = smov 0  }
   0x4   :  { %s498_s8 = smov 0   ;;  %s500_s9 = smov 0  }
   0x5   :  { %s502_s10 = smov 0   ;;  %s504_s11 = smov 0  }
   0x6   :  { %s506_s12 = smov 0   ;;  %s508_s13 = smov 0  }
   0x7 LB: > { %s257_s14 = sadd.s32 4294967295, %s480_s13   ;;  %s258_s15 = sadd.s32 4294967294, %s480_s13   ;;  %s480_s13 = sphi %s508_s13, %s17_s13   ;;  %s476_s12 = sphi %s506_s12, %s706_s12   ;;  %s472_s11 = sphi %s504_s11, %s705_s11   ;;  %s468_s10 = sphi %s502_s10, %s704_s10   ;;  %s464_s9 = sphi %s500_s9, %s703_s9   ;;  %s460_s8 = sphi %s498_s8, %s702_s8   ;;  %s456_s7 = sphi %s496_s7, %s701_s7   ;;  %s452_s6 = sphi %s494_s6, %s700_s6  }
   0x8   : > { %s26_s16 = sadd.s32 1, %s472_s11  ;;  %s29_s17 = sadd.s32 1, %s476_s12 }
   0x9   : > { %p27_p0 = scmp.ge.s32.totalorder %s26_s16, 2  ;;  %s38_s18 = sadd.s32 1, %s460_s8 }
   0xa   : > { %p45_p1 = scmp.ne.s32.totalorder %s460_s8, %s456_s7  ;;  %p46_p2 = scmp.eq.s32.totalorder %s480_s13, 0 }
   0xb   : > { %s708_s16 = smov (%p27_p0, %s26_s16), 0  ;;  %s710_s17 = smov (!%p27_p0, %s29_s17), %s476_s12 }
   0xc   : > { %s34_s19 = ssub.s32 %s472_s11, %s708_s16  ;;  %p547_p3 = por %p46_p2, %p45_p1 }
   0xd   : > { %p31_p4 = scmp.ge.s32.totalorder %s710_s17, 2  ;;  %p51_p5 = scmp.ne.s32.totalorder %s456_s7, %s452_s6 }
   0xe   : > { %p52_p6 = scmp.eq.s32.totalorder %s257_s14, 0  ;;  %p77_p7 = scmp.eq.s32.totalorder %s257_s14, 3 }
   0xf   : > { %s712_s17 = smov (%p31_p4, %s710_s17), 0  ;;  %p83_p10 = scmp.eq.s32.totalorder %s258_s15, 3 }
  0x10   : > { %p555_p8 = por %p52_p6, %p51_p5  ;;  %p559_p9 = por %p77_p7, %p45_p1 }
  0x11   : > { %s33_s23 = ssub.s32 %s476_s12, %s712_s17  ;;  %p565_p12 = por %p83_p10, %p51_p5 }
  0x12   : > { %s693_s22 = scalar_select %p559_p9, 1, 0 }
  0x13   : > { %s35_s24 = sor.u32 %s34_s19, %s33_s23  ;;  %p284_p13 = scmp.lt.s32.totalorder %s480_s13, 4 }
  0x14   : > { %p36_p11 = scmp.eq.s32.totalorder %s35_s24, 0  ;;  %s103_s26 = sand.u32 1, %s460_s8  }
  0x15   : > { %s694_s25 = scalar_select %p565_p12, 1, 0 }
  0x16   : > { %s572_s27 = scalar_select %p36_p11, %s460_s8, %s38_s18  }
  0x17   : > { %s261_s28 = sshll.u32 %s103_s26, 3  ;;  %s262_s29 = sshll.u32 %s476_s12, 1 }
  0x18   : > { %s112_s30 = sadd.s32 %s472_s11, %s262_s29  ;;  %s107_s2 = scalar_lea.vmem [#allocation2], %s261_s28 }
  0x19   : > { %s116_s3 = sshll.u32 %s107_s2, 4  ;;  %s263_s4 = sshll.u32 %s112_s30, 7  ;;  %s576_s3 = int_to_ptr.vmem [resolvable:$true] %s116_s3 }
  0x1a   : > { %s581_s15 = scalar_lea.hbm %s688_s0, %s263_s4  ;;  %p585_p0 = pnand %p284_p13, %p547_p3 }
  0x1b   : > { %s104_s19 = scalar_lea.sflag [#allocation3], %s103_s26  ;;  %s352_s23 = scalar_lea.hbm %s581_s15, 128 }
  0x1c   : > { %p353_p4 = scmp.ne.s32.totalorder %s581_s15, %s352_s23  ;;  %p354_p5 = pneg %p585_p0 }
  0x1d   : > { %s357_s28 = scalar_lea.hbm %s688_s0, 512  ;;  %p358_p3 = scmp.lt.u32.totalorder %s581_s15, %s688_s0 }
  0x1e   : > { %p355_p6 = pnand %p354_p5, %p353_p4  ;;  %p359_p10 = scmp.lt.u32.totalorder %s357_s28, %s352_s23 }
  0x1f   : > { %p361_p13 = scmp.lt.u32.totalorder %s352_s23, %s581_s15 }
  0x20   : > { %p356_p7 = pneg %p355_p6  ;;  %p360_p11 = por %p359_p10, %p358_p3 }
  0x22   : > { %p362_p1 = por %p361_p13, %p360_p11 }
  0x24   : > { %p363_p2 = pnand %p362_p1, %p356_p7 }
  0x26   : > { %366 = shalt.err (!%p363_p2)
}
  0x27   : > { %s367_s26 = scalar_lea.vmem %s576_s3, 128  ;;  %s482_s2 = smov [#allocation2]  }
  0x28   : > { %p368_p4 = scmp.ne.s32.totalorder %s576_s3, %s367_s26  ;;  %s372_s4 = sshll.u32 %s482_s2, 4  ;;  %s373_s4 = int_to_ptr.vmem [resolvable:$false] %s372_s4 }
  0x29   : > { %s374_s5 = scalar_lea.vmem %s373_s4, 256  ;;  %p375_p9 = scmp.lt.s32.totalorder %s576_s3, %s373_s4 }
  0x2a   : > { %p370_p6 = pnand %p368_p4, %p354_p5  ;;  %p376_p3 = scmp.lt.s32.totalorder %s374_s5, %s367_s26 }
  0x2c   : > { %p371_p12 = pneg %p370_p6  ;;  %p377_p10 = por %p376_p3, %p375_p9 }
  0x2e   : > { %p378_p11 = pnand %p377_p10, %p371_p12 }
  0x30   : > { %381 = shalt.err (!%p378_p11)
}
  0x31   : > { %279 = dma.hbm_to_vmem [thread:$0]  (!%p585_p0), %s581_s15, 128, %s576_s3, %s104_s19  }
  0x32   : > { %p696_p1 = scmp.lt.s32.totalorder %s480_s13, 5  ;;  %p697_p2 = scmp.ge.s32.totalorder %s480_s13, 1 }
  0x34   : > { %p122_p5 = pnand %p697_p2, %p696_p1 }
  0x35   : > { %s621_s14 = sand.u32 (!%p122_p5), 1, %s456_s7  }
  0x36   : > { %125 = sbr.rel (%p122_p5) target bundleno = 92 (0x5c), region = 24  ;;  %s265_s23 = sshll.u32 (!%p122_p5), %s621_s14, 3 }
  0x37   : > { %s128_s20 = scalar_lea.sflag (!%p122_p5), [#allocation3], %s621_s14  ;;  %s131_s24 = scalar_lea.vmem (!%p122_p5), [#allocation2], %s265_s23 }
  0x3d   : > { %443 = dma.done.wait (%p555_p8), %s128_s20, 128  }
  0x3e   : > { %445 = vsyncadd (%p555_p8), %s128_s20, 4294967168  ;;  %v150_v0 = vld [vmem:[%s131_s24] sm:$0xff]  ;;  %s268_s3 = sshll.u32 %s468_s10, 1  ;;  %s149_s18 = scalar_lea.vmem [#allocation5], %s265_s23  ;;  %vm154_vm0 = vcmask 654336  }
  0x3f   : > { %v151_v1 = vmax.f32 %v150_v0, 1e-05  ;;  %s168_s15 = sadd.s32 %s464_s9, %s268_s3  ;;  %s172_s19 = sshll.u32 %s149_s18, 4  ;;  %s631_s19 = int_to_ptr.vmem [resolvable:$true] %s172_s19 }
  0x40   : > { %s269_s28 = sshll.u32 %s168_s15, 7  ;;  %s157_s26 = scalar_lea.sflag [#allocation4], %s621_s14 }
  0x41   : > { %350 = vlog2.f32 %v151_v1  ;;  %s636_s30 = scalar_lea.hbm %s689_s1, %s269_s28  ;;  %s382_s10 = scalar_lea.vmem %s631_s19, 128 }
  0x42   : > { %p383_p8 = scmp.ne.s32.totalorder %s631_s19, %s382_s10  ;;  %p698_p9 = scmp.ne.s32.totalorder %s693_s22, 0 }
  0x43   : > { %s483_s9 = smov [#allocation5]  }
  0x44   : > { %p384_p12 = pnand %p383_p8, %p698_p9  ;;  %s386_s2 = sshll.u32 %s483_s9, 4  ;;  %s387_s2 = int_to_ptr.vmem [resolvable:$false] %s386_s2 }
  0x45   : > { %s388_s4 = scalar_lea.vmem %s387_s2, 256  ;;  %p389_p7 = scmp.lt.s32.totalorder %s631_s19, %s387_s2 }
  0x46   : > { %p385_p0 = pneg %p384_p12  ;;  %p390_p13 = scmp.lt.s32.totalorder %s388_s4, %s382_s10 }
  0x48   : > { %p391_p4 = por %p390_p13, %p389_p7 }
  0x4a   : > { %p392_p6 = pnand %p391_p4, %p385_p0 }
  0x4b   : > { %v351_v2 = vpop.eup %350 }
  0x4c   : > { %v153_v3 = vmul.f32 0.6931472, %v351_v2 }
  0x4e   : > { %155 = vst.msk [vmem:[%s149_s18] sm:$0xff] %vm154_vm0, %v153_v3 }
  0x4f   : > { %395 = shalt.err (!%p392_p6)
}
  0x50   : > { %s396_s5 = scalar_lea.hbm %s636_s30, 128  ;;  %s400_s20 = scalar_lea.hbm %s689_s1, 512 }
  0x51   : > { %p397_p3 = scmp.ne.s32.totalorder %s636_s30, %s396_s5  ;;  %p401_p1 = scmp.lt.u32.totalorder %s636_s30, %s689_s1 }
  0x52   : > { %p402_p2 = scmp.lt.u32.totalorder %s400_s20, %s396_s5  ;;  %p404_p8 = scmp.lt.u32.totalorder %s396_s5, %s636_s30 }
  0x53   : > { %p398_p10 = pnand %p397_p3, %p698_p9 }
  0x54   : > { %p403_p5 = por %p402_p2, %p401_p1 }
  0x55   : > { %p399_p11 = pneg %p398_p10 }
  0x56   : > { %p405_p12 = por %p404_p8, %p403_p5 }
  0x58   : > { %p406_p0 = pnand %p405_p12, %p399_p11 }
  0x5a   : > { %409 = shalt.err (!%p406_p0)
}
  0x5b   : > { %274 = dma.vmem_to_hbm [thread:$0]  (%p698_p9), %s631_s19, 128, %s636_s30, %s157_s26  }
  0x5c PF: > { %p285_p7 = scmp.ge.s32.totalorder %s480_s13, 2  ;;  %s184_s15 = sand.u32 1, %s452_s6  }
  0x5d   : > { %p699_p13 = scmp.ne.s32.totalorder %s694_s25, 0  ;;  %s185_s18 = scalar_lea.sflag [#allocation4], %s184_s15 }
  0x5f   : > { %p281_p4 = pnand %p285_p7, %p699_p13 }
  0x61   : > { %447 = dma.done.wait (!%p281_p4), %s185_s18, 128  }
  0x62   : > { %449 = vsyncadd (!%p281_p4), %s185_s18, 4294967168  ;;  %s17_s13 = sadd.s32 1, %s480_s13   ;;  %s700_s6 = smov %s456_s7 }
  0x63   : > { %p14_p6 = scmp.ge.s32.totalorder %s17_s13, 6   ;;  %s701_s7 = smov %s460_s8 }
  0x64   : > { %s702_s8 = smov %s572_s27  ;;  %s703_s9 = smov %s472_s11 }
  0x65   : > { %s704_s10 = smov %s476_s12  ;;  %s705_s11 = smov %s708_s16 }
  0x66   : > { %s706_s12 = smov %s712_s17  ;;  %16 = sbr.rel (!%p14_p6) target bundleno = 7 (0x7), region = 69 }
  0x6d   :  { %190 = vsyncpa [#allocation3], 1 }
  0x6e   :  { %192 = vsyncpa [#allocation3 + $0x1], 1 }
  0x6f   :  { %193 = vsyncpa [#allocation4], 1 }
  0x70   :  { %195 = vsyncpa [#allocation4 + $0x1], 1 }

</bundles_post_ra>
